<compile_context>
chip_gen: v5e
topology: v5e:2x2
jax: 0.10.0
libtpu: 0.0.40
codegen_flags: <defaults>
</compile_context>

<pallas_src>
import jax
import jax.numpy as jnp
from jax.experimental import pallas as pl
from jax.experimental.pallas import tpu as pltpu


def _copy_kernel(x_ref, o_ref):
    # Straight VMEM load -> VMEM store (element-wise identity on one tile).
    o_ref[...] = x_ref[...]


def _sublane_multiple(dtype):
    # f32 -> 8, bf16/f16 -> 16, int8/fp8 -> 32 (sub-32-bit dtypes pack along sublanes).
    bits = jnp.dtype(dtype).itemsize * 8
    return max(8, 256 // bits)


def _pick_lane(n):
    # Widest lane-dense last dim (multiple of 128) that divides n exactly,
    # so no padding or tail slicing is ever needed.
    for lane in (4096, 2048, 1024, 512, 256, 128):
        if n % lane == 0:
            return lane
    return None


def xshape_forward(x, name="name"):
    """Pallas implementation of xshape.forward: print the shape, return x."""
    # Host-side debug print — mirrors `print(self.name, ': ', x.shape)`.
    print(name, ": ", tuple(x.shape))

    orig_shape = x.shape
    dtype = x.dtype
    n = x.size

    lane = _pick_lane(n)
    if lane is None:
        # Ragged element count (not a multiple of 128): single full-extent block
        # on the original shape (block dims == array dims satisfy the (8,128) rule).
        # This module targets small debug tensors, so this path stays tiny.
        return pl.pallas_call(
            _copy_kernel,
            out_shape=jax.ShapeDtypeStruct(orig_shape, dtype),
        )(x)

    rows = n // lane
    x2d = x.reshape(rows, lane)

    # ~1 MiB per tile buffer; keep the sublane (row) count a legal multiple.
    sub = _sublane_multiple(dtype)
    bytes_per_row = lane * jnp.dtype(dtype).itemsize
    target_rows = max(1, (1 << 20) // bytes_per_row)
    if rows <= sub:
        block_rows = rows  # full extent along sublanes -> always legal
    else:
        block_rows = min(rows, max(sub, (target_rows // sub) * sub))

    grid = (pl.cdiv(rows, block_rows),)

    out2d = pl.pallas_call(
        _copy_kernel,
        out_shape=jax.ShapeDtypeStruct((rows, lane), dtype),
        grid_spec=pltpu.PrefetchScalarGridSpec(
            num_scalar_prefetch=0,
            grid=grid,
            in_specs=[pl.BlockSpec((block_rows, lane), lambda i: (i, 0))],
            out_specs=pl.BlockSpec((block_rows, lane), lambda i: (i, 0)),
        ),
        compiler_params=pltpu.CompilerParams(
            # Independent copy tiles: lets v7x shard across its 2 TensorCores.
            dimension_semantics=("parallel",),
        ),
    )(x2d)

    return out2d.reshape(orig_shape)


if __name__ == "__main__":
    key = jax.random.PRNGKey(0)
    x = jax.random.normal(key, (2, 4, 16, 16), dtype=jnp.float32)  # NCHW

    y = xshape_forward(x, name="xshape")
    jax.block_until_ready(y)

    assert y.shape == x.shape
    assert y.dtype == x.dtype
    assert bool(jnp.all(y == x))

    print("KERNEL_OK")
</pallas_src>

<mosaic_0001>
module attributes {stable_mosaic.version = 11 : i64} {
  func.func @_copy_kernel(%arg0: i32, %arg1: memref<1x2048xf32, #tpu.memory_space<vmem>>, %arg2: memref<1x2048xf32, #tpu.memory_space<vmem>>) attributes {dimension_semantics = [#tpu.dimension_semantics<parallel>], iteration_bounds = array<i64: 1>, scalar_prefetch = 0 : i64, scratch_operands = 0 : i64, tpu.core_type = #tpu.core_type<tc>, window_params = [{transform_indices = @transform_0, window_bounds = array<i64: 1, 2048>}, {transform_indices = @transform_1, window_bounds = array<i64: 1, 2048>}]} {
    %c0 = arith.constant 0 : index
    %c0_0 = arith.constant 0 : index
    %0 = vector.load %arg1[%c0, %c0_0] : memref<1x2048xf32, #tpu.memory_space<vmem>>, vector<1x2048xf32>
    %c0_1 = arith.constant 0 : index
    %c0_2 = arith.constant 0 : index
    %1 = vector.load %arg2[%c0_1, %c0_2] : memref<1x2048xf32, #tpu.memory_space<vmem>>, vector<1x2048xf32>
    tpu.vector_store %arg2[%c0_1, %c0_2], %0 {strides = array<i32>} : memref<1x2048xf32, #tpu.memory_space<vmem>>, vector<1x2048xf32>,
    return
  }
  func.func @transform_0(%arg0: i32) -> (i32, i32) {
    %c0_i32 = arith.constant 0 : i32
    %c0_i32_0 = arith.constant 0 : i32
    return %arg0, %c0_i32 : i32, i32
  }
  func.func @transform_1(%arg0: i32) -> (i32, i32) {
    %c0_i32 = arith.constant 0 : i32
    %c0_i32_0 = arith.constant 0 : i32
    return %arg0, %c0_i32 : i32, i32
  }
}

</mosaic_0001>

<bundles_post_ra>
// kernel: tpu_custom_call.1
= control target key start
LH: loop header
LB: loop body
LE: loop exit
PB: predicated region body
PF: predicated region fallthrough
CT: control target
= control target key end

     0   :  { %6 = vsyncpa [#allocation3], 0  ;;  %s116_s0 = inlined_call_operand.hbm [shape: f32[1,2048], index: 0, kind: input, shape index: {}]   ;;  %s117_s1 = inlined_call_operand.hbm [shape: f32[1,2048], index: 1, kind: output, shape index: {}]  }
   0x1   :  { %7 = vsyncpa [#allocation4], 0  ;;  %s13_s8 = sshll.u32 %s116_s0, 4  ;;  %s98_s9 = smov [#allocation2]   ;;  %s14_s8 = int_to_ptr.hbm [resolvable:$true] %s13_s8 }
   0x2   :  { %s15_s10 = sshll.u32 %s98_s9, 4  ;;  %s16_s10 = int_to_ptr.vmem [resolvable:$true] %s15_s10 }
   0x3   :  { %18 = dma.hbm_to_vmem [thread:$0]  %s14_s8, 256, %s16_s10, [#allocation3]  }
   0x4   :  { %94 = dma.done.wait [#allocation3], 256  }
   0x5   :  { %95 = vsyncadd [#allocation3], 4294967040  ;;  %s99_s11 = smov [#allocation5]   ;;  %s34_s15 = sshll.u32 %s117_s1, 4  ;;  %v23_v0 = vld [vmem:[#allocation2] sm:$0xff]  ;;  %v24_v1 = vld [vmem:[#allocation2 + $0x8] sm:$0xff]  ;;  %s35_s15 = int_to_ptr.hbm [resolvable:$true] %s34_s15 }
   0x6   :  { %s32_s12 = sshll.u32 %s99_s11, 4  ;;  %25 = vst [vmem:[#allocation5] sm:$0xff] %v23_v0  ;;  %s33_s12 = int_to_ptr.vmem [resolvable:$true] %s32_s12 }
   0x7   :  { %26 = vst [vmem:[#allocation5 + $0x8] sm:$0xff] %v24_v1 }
   0x8   :  { %37 = dma.vmem_to_hbm [thread:$0]  %s33_s12, 256, %s35_s15, [#allocation4]  }
   0x9   :  { %96 = dma.done.wait [#allocation4], 256  }
   0xa   :  { %97 = vsyncadd [#allocation4], 4294967040 }
   0xb   :  { %42 = vsyncpa [#allocation3], 1 }
   0xc   :  { %43 = vsyncpa [#allocation4], 1 }

</bundles_post_ra>
